<compile_context>
chip_gen: v7x
topology: tpu7x:2x2x1
jax: 0.10.0
libtpu: 0.0.40
codegen_flags: <defaults>
</compile_context>

<pallas_src>
import itertools

import numpy as np
import jax
import jax.numpy as jnp
from jax.experimental import pallas as pl
from jax.experimental.pallas import tpu as pltpu


def _round_up(x, m):
    return x + (-x % m)


def _cdiv(a, b):
    return -(-a // b)


# ----------------------------------------------------------------------------
# Glue: output-size formula and rulebook construction (index bookkeeping only).
# ----------------------------------------------------------------------------
def get_conv_output_size(spatial_shape, kernel_size, stride, padding, dilation):
    out = []
    for s, k, st, p, d in zip(spatial_shape, kernel_size, stride, padding, dilation):
        out.append((s + 2 * p - d * (k - 1) - 1) // st + 1)
    return out


def build_avgpool_rulebook(indices, batch_size, spatial_shape, kernel_size,
                           stride, padding, dilation, subm=False):
    """Replicates get_indice_pairs() semantics for pooling (host-side NumPy).

    Returns:
      outids   : [N_out, 1+ndim] int32 output (batch, coords...) indices
      out_pos  : [nnz] int64   output row of each (input, kernel-offset) pair
      pair_in  : [nnz] int64   input row of each pair
      out_shape: output spatial shape (list of ints)
    """
    indices = np.asarray(indices)
    ndim = len(spatial_shape)
    if subm:
        out_shape = list(spatial_shape)
    else:
        out_shape = get_conv_output_size(spatial_shape, kernel_size, stride,
                                         padding, dilation)
    n_in = indices.shape[0]

    out_strides = np.ones(ndim, dtype=np.int64)
    for d in range(ndim - 2, -1, -1):
        out_strides[d] = out_strides[d + 1] * out_shape[d + 1]
    batch_stride = int(out_strides[0]) * int(out_shape[0])

    pair_in, pair_out_lin = [], []
    for offs in itertools.product(*[range(k) for k in kernel_size]):
        valid = np.ones(n_in, dtype=bool)
        ocoords = np.zeros((n_in, ndim), dtype=np.int64)
        for d in range(ndim):
            num = indices[:, 1 + d].astype(np.int64) + padding[d] - offs[d] * dilation[d]
            q, r = np.divmod(num, stride[d])
            valid &= (r == 0) & (q >= 0) & (q < out_shape[d])
            ocoords[:, d] = q
        in_idx = np.nonzero(valid)[0]
        if in_idx.size == 0:
            continue
        lin = indices[in_idx, 0].astype(np.int64) * batch_stride
        for d in range(ndim):
            lin += ocoords[in_idx, d] * out_strides[d]
        pair_in.append(in_idx)
        pair_out_lin.append(lin)

    if pair_in:
        pair_in = np.concatenate(pair_in)
        pair_out_lin = np.concatenate(pair_out_lin)
    else:
        pair_in = np.zeros((0,), np.int64)
        pair_out_lin = np.zeros((0,), np.int64)

    uniq_lin, out_pos = np.unique(pair_out_lin, return_inverse=True)
    n_out = uniq_lin.shape[0]

    outids = np.zeros((n_out, 1 + ndim), dtype=np.int32)
    rem = uniq_lin.copy()
    outids[:, 0] = rem // batch_stride
    rem = rem % batch_stride
    for d in range(ndim):
        outids[:, 1 + d] = rem // out_strides[d]
        rem = rem % out_strides[d]

    return outids, out_pos, pair_in, out_shape


def _pack_dense_rulebook(out_pos, pair_in, n_out, n_in, tm, tk):
    """Host-side: pre-padded int8 one-hot gather matrix + f32 reciprocal counts.

    0 and 1 are exact in int8 (and in the bf16 the kernel upcasts them to);
    storing int8 halves the dominant HBM stream vs bf16.
    """
    no_p = _round_up(max(n_out, 1), tm)
    ni_p = _round_up(max(n_in, 1), tk)
    m = np.zeros((no_p, ni_p), dtype=np.int8)
    if out_pos.size:
        m[out_pos, pair_in] = 1
    cnt = np.zeros((no_p,), dtype=np.float32)
    if out_pos.size:
        np.add.at(cnt, out_pos, 1.0)
    inv_cnt = np.zeros((no_p, 1), dtype=np.float32)
    inv_cnt[:n_out, 0] = 1.0 / np.maximum(cnt[:n_out], 1.0)
    return m, inv_cnt, no_p, ni_p


# ----------------------------------------------------------------------------
# Pallas kernel: indice_avgpool hot path (tiled, pipelined, int8->bf16 MXU,
# accumulation directly into the resident f32 output block).
#   out[j, :] = (sum_i M[j, i] * features[i, :]) * inv_cnt[j]
# ----------------------------------------------------------------------------
def _indice_avgpool_kernel(m_ref, f_ref, inv_ref, o_ref):
    k = pl.program_id(2)

    # int8 (0/1) -> bf16 on the VPU (hidden under the M DMA bottleneck);
    # MXU matmul with f32 accumulation.
    partial = jnp.dot(m_ref[...].astype(jnp.bfloat16), f_ref[...],
                      preferred_element_type=jnp.float32)

    @pl.when(k == 0)
    def _init():
        o_ref[...] = partial

    @pl.when(k > 0)
    def _accumulate():
        o_ref[...] += partial

    @pl.when(k == pl.num_programs(2) - 1)
    def _finalize():
        # 1/count applied in f32 (never folded into the int8/bf16 M:
        # 1/3, 1/7, ... are not exact in low precision).
        o_ref[...] *= inv_ref[...]


def _even_tile(n, cap, align):
    """Largest tile <= ~cap that evenly splits n, rounded up to `align`.

    Padding-aware: n=520, cap=512 -> 2 tiles of 288 instead of 1 padded tile
    of 1024, so MXU work / HBM traffic track n rather than the cap.
    """
    n = max(int(n), 1)
    ntiles = _cdiv(n, cap)
    return _round_up(_cdiv(n, ntiles), align)


def _choose_tiles(n_out, n_in, c):
    # Channel tile (lane dim of F / out): cover the full padded C up to 512 so
    # the dominant M stream (whose index_map ignores the C axis) is read once.
    tc = _even_tile(_round_up(max(c, 1), 128), 512, 128)
    # Output-row tile: align 32 (int8 sublane packing; also mult of 8 for f32
    # output) with an even split of n_out.
    tm = _even_tile(n_out, 512, 32)
    # Reduction tile: long tk -> fewer grid steps / DMA descriptors and longer
    # bursts on the dominant M stream; double-buffered cost is only a few MiB.
    tk = _even_tile(n_in, 2048, 128)

    # v7x megacore: make sure the two *parallel* grid axes expose >= 2 cells
    # so both TensorCores get work even for small problems.
    c_p = _round_up(max(c, 1), tc)
    no_p = _round_up(max(n_out, 1), tm)
    if (no_p // tm) * (c_p // tc) == 1 and tm >= 64:
        tm //= 2
    return tm, tk, tc


def indice_avgpool_pallas(features, out_pos, pair_in, n_out):
    n_in, c = features.shape
    tm, tk, tc = _choose_tiles(n_out, n_in, c)
    c_p = _round_up(c, tc)

    # Host-built, pre-padded rulebook tensors (no device-side pad of M).
    m_np, inv_np, no_p, ni_p = _pack_dense_rulebook(out_pos, pair_in, n_out,
                                                    n_in, tm, tk)

    # Cast to bf16 BEFORE padding (halves the padding writeback).
    f = jnp.asarray(features, jnp.bfloat16)
    f = jnp.pad(f, ((0, ni_p - n_in), (0, c_p - c)))
    m = jnp.asarray(m_np)          # int8 [no_p, ni_p], values 0/1
    inv = jnp.asarray(inv_np)      # f32  [no_p, 1]

    grid = (no_p // tm, c_p // tc, ni_p // tk)

    out = pl.pallas_call(
        _indice_avgpool_kernel,
        out_shape=jax.ShapeDtypeStruct((no_p, c_p), jnp.float32),
        grid_spec=pltpu.PrefetchScalarGridSpec(
            num_scalar_prefetch=0,
            grid=grid,
            in_specs=[
                pl.BlockSpec((tm, tk), lambda i, j, k: (i, k)),   # M tile (int8)
                pl.BlockSpec((tk, tc), lambda i, j, k: (k, j)),   # F tile (bf16)
                pl.BlockSpec((tm, 1), lambda i, j, k: (i, 0)),    # 1/count (f32)
            ],
            out_specs=pl.BlockSpec((tm, tc), lambda i, j, k: (i, j)),
        ),
        compiler_params=pltpu.CompilerParams(
            dimension_semantics=("parallel", "parallel", "arbitrary"),
            vmem_limit_bytes=64 * 1024 * 1024,   # <= physical on v5e/v6e/v7x
        ),
    )(m, f, inv)
    return out[:n_out, :c]


# ----------------------------------------------------------------------------
# Module-level wrapper mirroring SparseAvgPool.forward.
# ----------------------------------------------------------------------------
class SparseAvgPool:
    def __init__(self, ndim, kernel_size, stride=1, padding=0, dilation=1, subm=False):
        if not isinstance(kernel_size, (list, tuple)):
            kernel_size = [kernel_size] * ndim
        if not isinstance(stride, (list, tuple)):
            stride = [stride] * ndim
        if not isinstance(padding, (list, tuple)):
            padding = [padding] * ndim
        if not isinstance(dilation, (list, tuple)):
            dilation = [dilation] * ndim
        self.ndim = ndim
        self.kernel_size = kernel_size
        self.stride = stride
        self.padding = padding
        self.dilation = dilation
        self.subm = subm

    def __call__(self, features, indices, spatial_shape, batch_size):
        outids, out_pos, pair_in, out_shape = build_avgpool_rulebook(
            indices, batch_size, spatial_shape, self.kernel_size, self.stride,
            self.padding, self.dilation, self.subm)
        n_out = outids.shape[0]
        if n_out == 0:
            return jnp.zeros((0, features.shape[1]), jnp.float32), outids, out_shape
        out_features = indice_avgpool_pallas(features, out_pos, pair_in, n_out)
        # (SparseTensor carries indice_dict / grid as metadata only.)
        return out_features, outids, out_shape


# ----------------------------------------------------------------------------
# Demo / self-test
# ----------------------------------------------------------------------------
if __name__ == "__main__":
    key = jax.random.PRNGKey(0)
    k_mask, k_feat = jax.random.split(key)

    batch_size, channels, H, W = 2, 4, 16, 16

    # Deterministic sparse occupancy pattern on the dense NCHW canvas.
    mask = jax.random.bernoulli(k_mask, p=0.2, shape=(batch_size, H, W))
    mask_np = np.asarray(mask)
    b_idx, h_idx, w_idx = np.nonzero(mask_np)
    indices = np.stack([b_idx, h_idx, w_idx], axis=1).astype(np.int32)  # [N, 3]
    n_active = indices.shape[0]

    features = jax.random.normal(k_feat, (n_active, channels), dtype=jnp.float32)

    pool = SparseAvgPool(ndim=2, kernel_size=3, stride=2, padding=1, dilation=1,
                         subm=False)
    out_features, outids, out_shape = pool(features, indices, [H, W], batch_size)
    out_features = jax.block_until_ready(out_features)

    # Reference check in plain NumPy (features bf16-rounded to match kernel's
    # bf16 MXU inputs; accumulation is f32 in both).
    _, out_pos, pair_in, _ = build_avgpool_rulebook(
        indices, batch_size, [H, W], pool.kernel_size, pool.stride,
        pool.padding, pool.dilation, pool.subm)
    n_out = int(out_pos.max()) + 1 if out_pos.size else 0
    feat_bf = np.asarray(jnp.asarray(features, jnp.bfloat16)).astype(np.float32)
    dense_m = np.zeros((n_out, n_active), np.float32)
    dense_m[out_pos, pair_in] = 1.0
    cnt = dense_m.sum(axis=1, keepdims=True)
    ref = (dense_m @ feat_bf) / np.maximum(cnt, 1.0)

    assert out_features.shape == (n_out, channels)
    np.testing.assert_allclose(np.asarray(out_features), ref, rtol=1e-4, atol=1e-5)

    print("KERNEL_OK")
</pallas_src>

<mosaic_0001>
module attributes {stable_mosaic.version = 11 : i64} {
  func.func @_indice_avgpool_kernel(%arg0: i32, %arg1: i32, %arg2: i32, %arg3: memref<64x128xi8, #tpu.memory_space<vmem>>, %arg4: memref<128x128xbf16, #tpu.memory_space<vmem>>, %arg5: memref<64x1xf32, #tpu.memory_space<vmem>>, %arg6: memref<64x128xf32, #tpu.memory_space<vmem>>) attributes {dimension_semantics = [#tpu.dimension_semantics<parallel>, #tpu.dimension_semantics<parallel>, #tpu.dimension_semantics<arbitrary>], iteration_bounds = array<i64: 2, 1, 1>, scalar_prefetch = 0 : i64, scratch_operands = 0 : i64, tpu.core_type = #tpu.core_type<tc>, window_params = [{transform_indices = @transform_0, window_bounds = array<i64: 64, 128>}, {transform_indices = @transform_1, window_bounds = array<i64: 128, 128>}, {transform_indices = @transform_2, window_bounds = array<i64: 64, 1>}, {transform_indices = @transform_3, window_bounds = array<i64: 64, 128>}]} {
    %c0 = arith.constant 0 : index
    %c0_0 = arith.constant 0 : index
    %0 = vector.load %arg3[%c0, %c0_0] : memref<64x128xi8, #tpu.memory_space<vmem>>, vector<64x128xi8>
    %1 = arith.sitofp %0 : vector<64x128xi8> to vector<64x128xbf16>
    %c0_1 = arith.constant 0 : index
    %c0_2 = arith.constant 0 : index
    %2 = vector.load %arg4[%c0_1, %c0_2] : memref<128x128xbf16, #tpu.memory_space<vmem>>, vector<128x128xbf16>
    %cst = arith.constant dense<0.000000e+00> : vector<64x128xf32>
    %3 = tpu.matmul %1, %2, %cst {dimension_numbers = #tpu.dot_dimension_numbers<[1], [0], [0], [1], [0, 0, 1, 1], [], []>} : vector<64x128xbf16>, vector<128x128xbf16>, vector<64x128xf32> -> vector<64x128xf32>
    %c0_i32 = arith.constant 0 : i32
    %4 = arith.cmpi eq, %arg2, %c0_i32 : i32
    %5 = arith.extui %4 : i1 to i32
    %c0_i32_3 = arith.constant 0 : i32
    %6 = arith.cmpi ne, %5, %c0_i32_3 : i32
    scf.if %6 {
      %c0_8 = arith.constant 0 : index
      %c0_9 = arith.constant 0 : index
      %13 = vector.load %arg6[%c0_8, %c0_9] : memref<64x128xf32, #tpu.memory_space<vmem>>, vector<64x128xf32>
      tpu.vector_store %arg6[%c0_8, %c0_9], %3 {strides = array<i32>} : memref<64x128xf32, #tpu.memory_space<vmem>>, vector<64x128xf32>,
    } else {
    }
    %c0_i32_4 = arith.constant 0 : i32
    %7 = arith.cmpi sgt, %arg2, %c0_i32_4 : i32
    %8 = arith.extui %7 : i1 to i32
    %c0_i32_5 = arith.constant 0 : i32
    %9 = arith.cmpi ne, %8, %c0_i32_5 : i32
    scf.if %9 {
      %c0_8 = arith.constant 0 : index
      %c0_9 = arith.constant 0 : index
      %13 = vector.load %arg6[%c0_8, %c0_9] : memref<64x128xf32, #tpu.memory_space<vmem>>, vector<64x128xf32>
      %14 = arith.addf %13, %3 : vector<64x128xf32>
      %c0_10 = arith.constant 0 : index
      %c0_11 = arith.constant 0 : index
      %15 = vector.load %arg6[%c0_10, %c0_11] : memref<64x128xf32, #tpu.memory_space<vmem>>, vector<64x128xf32>
      tpu.vector_store %arg6[%c0_10, %c0_11], %14 {strides = array<i32>} : memref<64x128xf32, #tpu.memory_space<vmem>>, vector<64x128xf32>,
    } else {
    }
    %c0_i32_6 = arith.constant 0 : i32
    %10 = arith.cmpi eq, %arg2, %c0_i32_6 : i32
    %11 = arith.extui %10 : i1 to i32
    %c0_i32_7 = arith.constant 0 : i32
    %12 = arith.cmpi ne, %11, %c0_i32_7 : i32
    scf.if %12 {
      %c0_8 = arith.constant 0 : index
      %c0_9 = arith.constant 0 : index
      %13 = vector.load %arg6[%c0_8, %c0_9] : memref<64x128xf32, #tpu.memory_space<vmem>>, vector<64x128xf32>
      %c0_10 = arith.constant 0 : index
      %c0_11 = arith.constant 0 : index
      %14 = vector.load %arg5[%c0_10, %c0_11] : memref<64x1xf32, #tpu.memory_space<vmem>>, vector<64x1xf32>
      %15 = vector.broadcast %14 : vector<64x1xf32> to vector<64x128xf32>
      %16 = arith.mulf %13, %15 : vector<64x128xf32>
      %c0_12 = arith.constant 0 : index
      %c0_13 = arith.constant 0 : index
      %17 = vector.load %arg6[%c0_12, %c0_13] : memref<64x128xf32, #tpu.memory_space<vmem>>, vector<64x128xf32>
      tpu.vector_store %arg6[%c0_12, %c0_13], %16 {strides = array<i32>} : memref<64x128xf32, #tpu.memory_space<vmem>>, vector<64x128xf32>,
    } else {
    }
    return
  }
  func.func @transform_0(%arg0: i32, %arg1: i32, %arg2: i32) -> (i32, i32) {
    %c0_i32 = arith.constant 0 : i32
    return %arg0, %arg2 : i32, i32
  }
  func.func @transform_1(%arg0: i32, %arg1: i32, %arg2: i32) -> (i32, i32) {
    %c0_i32 = arith.constant 0 : i32
    return %arg2, %arg1 : i32, i32
  }
  func.func @transform_2(%arg0: i32, %arg1: i32, %arg2: i32) -> (i32, i32) {
    %c0_i32 = arith.constant 0 : i32
    %c0_i32_0 = arith.constant 0 : i32
    return %arg0, %c0_i32 : i32, i32
  }
  func.func @transform_3(%arg0: i32, %arg1: i32, %arg2: i32) -> (i32, i32) {
    %c0_i32 = arith.constant 0 : i32
    return %arg0, %arg1 : i32, i32
  }
}

</mosaic_0001>

<bundles_post_ra>
// kernel: tpu_custom_call.1
= control target key start
LH: loop header
LB: loop body
LE: loop exit
PB: predicated region body
PF: predicated region fallthrough
CT: control target
= control target key end

     0   :  { %s1339_s0 = inlined_call_operand.hbm [shape: s8[128,128], index: 0, kind: input, shape index: {}]   ;;  %s1340_s1 = inlined_call_operand.hbm [shape: bf16[128,128], index: 1, kind: input, shape index: {}]   ;;  %s1341_s2 = inlined_call_operand.hbm [shape: f32[128,1], index: 2, kind: input, shape index: {}]   ;;  %s1342_s3 = inlined_call_operand.hbm [shape: f32[128,128], index: 3, kind: output, shape index: {}]  }
   0x1   :  { %1348 = sst [smem:[#allocation13_spill]] %s1339_s0 }
   0x2   :  { %8 = vsyncpa [#allocation3], 0 }
   0x3   :  { %10 = vsyncpa [#allocation3 + $0x1], 0 }
   0x4   :  { %11 = vsyncpa [#allocation6], 0 }
   0x5   :  { %12 = vsyncpa [#allocation4], 0 }
   0x6   :  { %14 = vsyncpa [#allocation4 + $0x1], 0  ;;  %s1058_s12 = smov 0   ;;  %s1060_s13 = smov 0  }
   0x7   :  { %s1062_s14 = smov 0   ;;  %s1064_s15 = smov 0  }
   0x8   :  { %s1066_s16 = smov 0   ;;  %s1068_s17 = smov 0  }
   0x9 LB: > { %s39_s18 = sadd.s32 1, %s1021_s16  ;;  %s48_s19 = sadd.s32 1, %s1013_s14  ;;  %s1025_s17 = sphi %s1068_s17, %s20_s17   ;;  %s1021_s16 = sphi %s1066_s16, %s1368_s16   ;;  %s1017_s15 = sphi %s1064_s15, %s1367_s15   ;;  %s1013_s14 = sphi %s1062_s14, %s1366_s14   ;;  %s1009_s13 = sphi %s1060_s13, %s1365_s13   ;;  %s1005_s12 = sphi %s1058_s12, %s1364_s12  }
   0xa   : > { %p41_p0 = scmp.ge.s32.totalorder %s39_s18, 2  ;;  %p55_p1 = scmp.ne.s32.totalorder %s1013_s14, %s1009_s13 }
   0xb   : > { %p56_p2 = scmp.eq.s32.totalorder %s1025_s17, 0  ;;  %p778_p5 = scmp.lt.s32.totalorder %s1025_s17, 2 }
   0xc   : > { %s1370_s18 = smov (%p41_p0, %s39_s18), 0  ;;  %s184_s21 = sand.u32 1, %s1025_s17  }
   0xd   : > { %p57_p4 = por %p56_p2, %p55_p1  ;;  %s43_s20 = ssub.s32 %s1021_s16, %s1370_s18 }
   0xe   : > { %p46_p6 = scmp.eq.s32.totalorder %s43_s20, 0  ;;  %s186_s22 = sand.u32 1, %s1013_s14  }
   0xf   : > { %s697_s23 = sshll.u32 %s1021_s16, 8  ;;  %s673_s25 = sshll.u32 %s186_s22, 4 }
  0x10   : > { %s1106_s24 = scalar_select %p46_p6, %s1013_s14, %s48_s19  }
  0x11   : > { %s1349_s0 = sld [smem:[#allocation13_spill]]  ;;  %p1113_p7 = pnand %p778_p5, %p57_p4 }
  0x12   : > { %s188_s30 = scalar_lea.vmem [#allocation2], %s673_s25  ;;  %s1119_s5 = sshll.u32 %s186_s22, 6 }
  0x13   : > { %s196_s4 = sshll.u32 %s188_s30, 4  ;;  %s1121_s6 = scalar_lea.sflag [#allocation3], %s184_s21  ;;  %s1117_s4 = int_to_ptr.vmem [resolvable:$true] %s196_s4 }
  0x14   : > { %p849_p9 = pneg %p1113_p7 }
  0x17   : > { %s1111_s28 = scalar_lea.hbm %s1349_s0, %s697_s23  ;;  %s852_s10 = scalar_lea.hbm %s1349_s0, 512 }
  0x18   : > { %s847_s7 = scalar_lea.hbm %s1111_s28, 256  ;;  %p853_p12 = scmp.lt.u32.totalorder %s1111_s28, %s1349_s0 }
  0x19   : > { %p848_p8 = scmp.ne.s32.totalorder %s1111_s28, %s847_s7  ;;  %p854_p13 = scmp.lt.u32.totalorder %s852_s10, %s847_s7 }
  0x1a   : > { %p856_p2 = scmp.lt.u32.totalorder %s847_s7, %s1111_s28 }
  0x1b   : > { %p850_p10 = pnand %p849_p9, %p848_p8  ;;  %p855_p0 = por %p854_p13, %p853_p12 }
  0x1d   : > { %p851_p11 = pneg %p850_p10  ;;  %p857_p4 = por %p856_p2, %p855_p0 }
  0x1f   : > { %p858_p5 = pnand %p857_p4, %p851_p11 }
  0x21   : > { %861 = shalt.err (!%p858_p5)
}
  0x22   : > { %s862_s20 = scalar_lea.vmem %s1117_s4, 256  ;;  %s1027_s21 = smov [#allocation2]  }
  0x23   : > { %p863_p6 = scmp.ne.s32.totalorder %s1117_s4, %s862_s20  ;;  %s867_s22 = sshll.u32 %s1027_s21, 4  ;;  %s868_s22 = int_to_ptr.vmem [resolvable:$false] %s867_s22 }
  0x24   : > { %s869_s23 = scalar_lea.vmem %s868_s22, 512  ;;  %p870_p3 = scmp.lt.s32.totalorder %s1117_s4, %s868_s22 }
  0x25   : > { %p865_p8 = pnand %p863_p6, %p849_p9  ;;  %p871_p12 = scmp.lt.s32.totalorder %s869_s23, %s862_s20 }
  0x27   : > { %p866_p10 = pneg %p865_p8  ;;  %p872_p13 = por %p871_p12, %p870_p3 }
  0x29   : > { %p873_p0 = pnand %p872_p13, %p866_p10 }
  0x2b   : > { %876 = shalt.err (!%p873_p0)
}
  0x2c   : > { %s1345_s25 = smov 128   ;;  %s1029_s26 = smov 8  }
  0x2d   : > { %769 = dma.hbm_to_vmem [thread:$0]  (!%p1113_p7), %s1111_s28, 256, %s1117_s4, %s1121_s6, %s1345_s25, %s1345_s25, %s1029_s26  }
  0x2e   : > { %s1153_s27 = sadd.s32 4294967295, %s1025_s17   ;;  %s669_s30 = sadd.s32 4294967294, %s1025_s17  }
  0x2f   : > { %p61_p3 = scmp.ne.s32.totalorder %s1009_s13, %s1005_s12  ;;  %p1343_p11 = scmp.eq.s32.totalorder %s1153_s27, 0 }
  0x30   : > { %p141_p2 = scmp.eq.s32.totalorder %s1153_s27, 1  ;;  %p147_p4 = scmp.eq.s32.totalorder %s669_s30, 1 }
  0x31   : > { %p1162_p5 = por %p1343_p11, %p61_p3  ;;  %p670_p6 = scmp.ge.s32.totalorder %s1025_s17, 1 }
  0x32   : > { %p1170_p8 = por %p141_p2, %p55_p1  ;;  %p1174_p10 = por %p147_p4, %p61_p3 }
  0x33   : > { %s1351_s7 = scalar_select %p1162_p5, 1, 0 }
  0x34   : > { %s1352_s28 = scalar_select %p1170_p8, 1, 0 }
  0x35   : > { %s1353_s4 = scalar_select %p1174_p10, 1, 0 }
  0x36   : > { %p154_p12 = scmp.lt.s32.totalorder %s1025_s17, 3  ;;  %s210_s8 = scalar_lea.vmem [#allocation7], %s1119_s5 }
  0x37   : > { %s217_s9 = sshll.u32 %s210_s8, 4  ;;  %s1030_s11 = smov [#allocation5]   ;;  %s1194_s9 = int_to_ptr.vmem [resolvable:$true] %s217_s9 }
  0x38   : > { %p1180_p13 = pnand %p670_p6, %p154_p12  ;;  %s170_s19 = sshll.u32 %s1030_s11, 4  ;;  %s1184_s19 = int_to_ptr.vmem [resolvable:$true] %s170_s19 }
  0x39   : > { %s698_s20 = sshll.u32 %s1021_s16, 10 }
  0x3a   : > { %s1354_s10 = scalar_select %p1180_p13, 1, 0 }
  0x3b   : > { %p762_p1 = pneg %p1180_p13  ;;  %s1192_s23 = scalar_lea.hbm %s1341_s2, %s698_s20 }
  0x3c   : > { %s877_s30 = scalar_lea.hbm %s1192_s23, 1024  ;;  %s882_s20 = scalar_lea.hbm %s1341_s2, 2048 }
  0x3d   : > { %p1198_p0 = pnand %p762_p1, %p1343_p11  ;;  %p878_p3 = scmp.ne.s32.totalorder %s1192_s23, %s877_s30 }
  0x3e   : > { %p883_p6 = scmp.lt.u32.totalorder %s1192_s23, %s1341_s2  ;;  %p884_p12 = scmp.lt.u32.totalorder %s882_s20, %s877_s30 }
  0x3f   : > { %p880_p2 = pnand %p878_p3, %p849_p9  ;;  %p886_p1 = scmp.lt.u32.totalorder %s877_s30, %s1192_s23 }
  0x40   : > { %p885_p10 = por %p884_p12, %p883_p6 }
  0x41   : > { %p881_p4 = pneg %p880_p2 }
  0x42   : > { %p887_p11 = por %p886_p1, %p885_p10 }
  0x44   : > { %p888_p8 = pnand %p887_p11, %p881_p4 }
  0x46   : > { %891 = shalt.err (!%p888_p8)
}
  0x47   : > { %s892_s25 = scalar_lea.vmem %s1194_s9, 1024  ;;  %s1031_s8 = smov [#allocation7]  }
  0x48   : > { %p893_p3 = scmp.ne.s32.totalorder %s1194_s9, %s892_s25  ;;  %s897_s11 = sshll.u32 %s1031_s8, 4  ;;  %s898_s11 = int_to_ptr.vmem [resolvable:$false] %s897_s11 }
  0x49   : > { %s899_s21 = scalar_lea.vmem %s898_s11, 2048  ;;  %p900_p13 = scmp.lt.s32.totalorder %s1194_s9, %s898_s11 }
  0x4a   : > { %p895_p2 = pnand %p893_p3, %p849_p9  ;;  %p901_p6 = scmp.lt.s32.totalorder %s899_s21, %s892_s25 }
  0x4c   : > { %p896_p5 = pneg %p895_p2  ;;  %p902_p12 = por %p901_p6, %p900_p13 }
  0x4e   : > { %p903_p10 = pnand %p902_p12, %p896_p5 }
  0x50   : > { %906 = shalt.err (!%p903_p10)
}
  0x51   : > { %s1356_s30 = smov 128   ;;  %s907_s8 = scalar_lea.hbm %s1340_s1, 1024 }
  0x52   : > { %772 = dma.hbm_to_vmem [thread:$0]  (!%p1113_p7), %s1192_s23, 1024, %s1194_s9, %s1121_s6, %s1356_s30, %s1356_s30, %s1029_s26  }
  0x53   : > { %p908_p9 = scmp.ne.s32.totalorder %s1340_s1, %s907_s8  ;;  %p909_p11 = pneg %p1198_p0 }
  0x54   : > { %p914_p13 = scmp.lt.u32.totalorder %s907_s8, %s1340_s1 }
  0x55   : > { %p910_p5 = pnand %p909_p11, %p908_p9 }
  0x57   : > { %p911_p8 = pneg %p910_p5 }
  0x59   : > { %p916_p4 = pnand %p914_p13, %p911_p8 }
  0x5b   : > { %919 = shalt.err (!%p916_p4)
}
  0x5c   : > { %s920_s6 = scalar_lea.vmem %s1184_s19, 1024  ;;  %p928_p2 = scmp.lt.s32.totalorder %s1184_s19, %s1184_s19 }
  0x5d   : > { %p921_p7 = scmp.ne.s32.totalorder %s1184_s19, %s920_s6  ;;  %p929_p6 = scmp.lt.s32.totalorder %s920_s6, %s920_s6 }
  0x5f   : > { %p923_p1 = pnand %p921_p7, %p909_p11  ;;  %p930_p12 = por %p929_p6, %p928_p2 }
  0x61   : > { %p924_p3 = pneg %p923_p1 }
  0x63   : > { %p931_p10 = pnand %p930_p12, %p924_p3 }
  0x65   : > { %934 = shalt.err (!%p931_p10)
}
  0x66   : > { %s1032_s0 = smov 64   ;;  %s1033_s26 = smov 4  }
  0x67   : > { %765 = dma.hbm_to_vmem [thread:$0]  (!%p1198_p0), %s1340_s1, 1024, %s1184_s19, [#allocation6], %s1032_s0, %s1032_s0, %s1033_s26  }
  0x68   : > { %p1357_p9 = scmp.ne.s32.totalorder %s1354_s10, 0 }
  0x69   : > { %s231_s21 = sand.u32 (!%p1357_p9), 1, %s1153_s27   ;;  %s1254_s30 = sand.u32 (!%p1357_p9), 1, %s1009_s13  }
  0x6a   : > { %229 = sbr.rel (%p1357_p9) target bundleno = 386 (0x182), region = 32  ;;  %s680_s20 = sshll.u32 (!%p1357_p9), %s1254_s30, 4 }
  0x6b   : > { %s232_s22 = scalar_lea.sflag (!%p1357_p9), [#allocation3], %s231_s21  ;;  %s235_s8 = scalar_lea.vmem (!%p1357_p9), [#allocation2], %s680_s20 }
  0x6c   : > { %p1358_p11 = scmp.ne.s32.totalorder (!%p1357_p9), %s1351_s7, 0 }
  0x71   : > { %988 = dma.done.wait (%p1358_p11), %s232_s22, 256  }
  0x72   : > { %990 = vsyncadd (%p1358_p11), %s232_s22, 4294967040  ;;  %p1359_p0 = scmp.eq.s32.totalorder %s1153_s27, 0 }
  0x74   : > { %992 = dma.done.wait (%p1359_p0), [#allocation6], 1024   ;;  %p1360_p5 = pmov %p1359_p0 }
  0x75   : > { %s682_s10 = sshll.u32 %s1254_s30, 6 }
  0x76   : > { %994 = vsyncadd (%p1360_p5), [#allocation6], 4294966272  ;;  %s1268_s19 = scalar_lea.vmem [#allocation7], %s682_s10 }
  0x77   : > { %996 = dma.done.wait (%p1358_p11), %s232_s22, 1024  }
  0x78   : > { %998 = vsyncadd (%p1358_p11), %s232_s22, 4294966272  ;;  %v1034_v0 = vmov 0   ;;  %v839_v1 = vld [vmem:[#allocation5] sm:$0xff]   ;;  %v840_v2 = vld [vmem:[#allocation5 + $0x8] sm:$0xff]   ;;  %s699_s27 = sshll.u32 %s1017_s15, 10  ;;  %s275_s7 = scalar_lea.vmem [#allocation8], %s682_s10 }
  0x79   : > { %838 = vset.pattern.permute.xlu1 %v1034_v0  ;;  %837 = vset.pattern.permute.xlu0 %v1034_v0  ;;  %v841_v3 = vld [vmem:[#allocation5 + $0x10] sm:$0xff]   ;;  %v842_v4 = vld [vmem:[#allocation5 + $0x18] sm:$0xff]   ;;  %v467_v10 = vld [vmem:[%s1268_s19] sm:$0xff]  ;;  %s546_s5 = sshll.u32 %s275_s7, 4  ;;  %s1288_s29 = scalar_lea.hbm %s1342_s3, %s699_s27  ;;  %s1290_s5 = int_to_ptr.vmem [resolvable:$true] %s546_s5 }
  0x7a   : > { %712 = vmatprep.subr.bf16.mxu0 %v839_v1  ;;  %736 = vmatprep.subr.bf16.mxu1 %v839_v1  ;;  %v281_v5 = vld [vmem:[%s235_s8] sm:$0xff]  ;;  %v282_v6 = vld [vmem:[%s235_s8 + $0x8] sm:$0xff]  ;;  %s532_s25 = scalar_lea.sflag [#allocation4], %s1254_s30  ;;  %s935_s6 = scalar_lea.vmem %s1290_s5, 1024 }
  0x7b   : > { %713 = vmatpush3.bf16.msra.mxu0 %v839_v1  ;;  %744 = vmatpush3.bf16.msra.mxu1 %v839_v1  ;;  %v469_v7 = vld [vmem:[%s1268_s19 + $0x10] sm:$0xff]  ;;  %v283_v8 = vunpack.c.l.s8.bf16 %v281_v5  ;;  %v285_v9 = vunpack.c.l.s8.bf16 %v282_v6  ;;  %v470_v11 = vld [vmem:[%s1268_s19 + $0x18] sm:$0xff]  ;;  %v468_v12 = vld [vmem:[%s1268_s19 + $0x8] sm:$0xff]  ;;  %v284_v21 = vunpack.c.h.s8.bf16 %v281_v5  ;;  %v286_v22 = vunpack.c.h.s8.bf16 %v282_v6  ;;  %p936_p8 = scmp.ne.s32.totalorder %s1290_s5, %s935_s6  ;;  %p1361_p13 = scmp.ne.s32.totalorder %s1352_s28, 0 }
  0x7c   : > { %714 = vmatprep.subr.bf16.mxu0 %v840_v2  ;;  %737 = vmatprep.subr.bf16.mxu1 %v840_v2  ;;  %v843_v13 = vld [vmem:[#allocation5 + $0x20] sm:$0xff]   ;;  %v472_v14 = vld [vmem:[%s1268_s19 + $0x28] sm:$0xff]  ;;  %v474_v17 = vld [vmem:[%s1268_s19 + $0x38] sm:$0xff]  ;;  %s1035_s0 = smov [#allocation8]  }
  0x7d   : > { %487 = vperm.xlu1 %838, %v469_v7   ;;  %477 = vperm.xlu0 %837, %v467_v10   ;;  %v471_v15 = vld [vmem:[%s1268_s19 + $0x20] sm:$0xff]  ;;  %v844_v16 = vld [vmem:[#allocation5 + $0x28] sm:$0xff]   ;;  %v473_v18 = vld [vmem:[%s1268_s19 + $0x30] sm:$0xff]  ;;  %p937_p4 = pnand %p936_p8, %p1361_p13  ;;  %s939_s26 = sshll.u32 %s1035_s0, 4  ;;  %s940_s26 = int_to_ptr.vmem [resolvable:$false] %s939_s26 }
  0x7e   : > { %728 = vmatprep.mubr.bf16.mxu0 %v283_v8  ;;  %732 = vmatprep.mubr.bf16.mxu1 %v285_v9  ;;  %v845_v19 = vld [vmem:[#allocation5 + $0x30] sm:$0xff]   ;;  %v846_v20 = vld [vmem:[#allocation5 + $0x38] sm:$0xff]   ;;  %s941_s9 = scalar_lea.vmem %s940_s26, 2048  ;;  %p942_p1 = scmp.lt.s32.totalorder %s1290_s5, %s940_s26 }
  0x7f   : > { %715 = vmatpush3.bf16.msra.mxu0 %v840_v2  ;;  %745 = vmatpush3.bf16.msra.mxu1 %v840_v2  ;;  %p938_p7 = pneg %p937_p4  ;;  %p943_p3 = scmp.lt.s32.totalorder %s941_s9, %s935_s6 }
  0x80   : > { %716 = vmatprep.subr.bf16.mxu0 %v841_v3  ;;  %738 = vmatprep.subr.bf16.mxu1 %v841_v3 }
  0x81   : > { %492 = vperm.xlu1 %838, %v470_v11   ;;  %482 = vperm.xlu0 %837, %v468_v12   ;;  %p944_p2 = por %p943_p3, %p942_p1 }
  0x83   : > { %717 = vmatpush3.bf16.msra.mxu0 %v841_v3  ;;  %746 = vmatpush3.bf16.msra.mxu1 %v841_v3  ;;  %p945_p6 = pnand %p944_p2, %p938_p7 }
  0x84   : > { %718 = vmatprep.subr.bf16.mxu0 %v842_v4  ;;  %739 = vmatprep.subr.bf16.mxu1 %v842_v4 }
  0x85   : > { %502 = vperm.xlu1 %838, %v472_v14   ;;  %497 = vperm.xlu0 %837, %v471_v15  }
  0x87   : > { %719 = vmatpush3.bf16.msra.mxu0 %v842_v4  ;;  %747 = vmatpush3.bf16.msra.mxu1 %v842_v4 }
  0x88   : > { %720 = vmatprep.subr.bf16.mxu0 %v843_v13  ;;  %740 = vmatprep.subr.bf16.mxu1 %v843_v13 }
  0x89   : > { %512 = vperm.xlu1 %838, %v474_v17   ;;  %507 = vperm.xlu0 %837, %v473_v18  }
  0x8b   : > { %721 = vmatpush3.bf16.msra.mxu0 %v843_v13  ;;  %748 = vmatpush3.bf16.msra.mxu1 %v843_v13 }
  0x8c   : > { %722 = vmatprep.subr.bf16.mxu0 %v844_v16  ;;  %741 = vmatprep.subr.bf16.mxu1 %v844_v16 }
  0x8f   : > { %723 = vmatpush3.bf16.msra.mxu0 %v844_v16  ;;  %749 = vmatpush3.bf16.msra.mxu1 %v844_v16 }
  0x90   : > { %724 = vmatprep.subr.bf16.mxu0 %v845_v19  ;;  %742 = vmatprep.subr.bf16.mxu1 %v845_v19 }
  0x93   : > { %725 = vmatpush3.bf16.msra.mxu0 %v845_v19  ;;  %750 = vmatpush3.bf16.msra.mxu1 %v845_v19 }
  0x94   : > { %726 = vmatprep.subr.bf16.mxu0 %v846_v20  ;;  %743 = vmatprep.subr.bf16.mxu1 %v846_v20 }
  0x97   : > { %727 = vmatpush3.bf16.msra.mxu0 %v846_v20  ;;  %751 = vmatpush3.bf16.msra.mxu1 %v846_v20 }
  0x9a   : > { %729 = vmatmul.mubr.bf16.vlgmr.msra.gmra.mrb[0].mxu0 %v284_v21  ;;  %733 = vmatmul.mubr.bf16.vlgmr.msra.gmra.mrb[0].mxu1 %v286_v22 }
  0xfc   : > { %v488_v23 = vpop.permute.xlu1 %487  ;;  %v478_v24 = vpop.permute.xlu0 %477 }
 0x100   : > { %v493_v25 = vpop.permute.xlu1 %492  ;;  %v483_v26 = vpop.permute.xlu0 %482 }
 0x104   : > { %v503_v27 = vpop.permute.xlu1 %502  ;;  %v498_v28 = vpop.permute.xlu0 %497 }
 0x108   : > { %v513_v29 = vpop.permute.xlu1 %512  ;;  %v508_v30 = vpop.permute.xlu0 %507 }
 0x16d   : > { %v730_v31 = vpop.f32.mrb[0].mxu0  ;;  %v734_v32 = vpop.f32.mrb[0].mxu1 }
 0x16e   : > { %v517_v33 = vmul.f32 %v730_v31, %v488_v23  ;;  %v521_v34 = vmul.f32 %v734_v32, %v508_v30  ;;  %v385_v35 = vpop.f32.mrb[1].mxu0  ;;  %v401_v36 = vpop.f32.mrb[1].mxu1 }
 0x16f   : > { %v515_v37 = vmul.f32 %v478_v24, %v385_v35  ;;  %v519_v38 = vmul.f32 %v498_v28, %v401_v36  ;;  %v731_v39 = vpop.f32.mrb[2].mxu0  ;;  %v735_v40 = vpop.f32.mrb[2].mxu1 }
 0x170   : > { %525 = vst [vmem:[%s275_s7 + $0x10] sm:$0xff] %v517_v33  ;;  %529 = vst [vmem:[%s275_s7 + $0x30] sm:$0xff] %v521_v34  ;;  %v518_v41 = vmul.f32 %v731_v39, %v493_v25  ;;  %v522_v42 = vmul.f32 %v735_v40, %v513_v29  ;;  %v388_v43 = vpop.f32.mrb[3].mxu0  ;;  %v404_v44 = vpop.f32.mrb[3].mxu1 }
 0x171   : > { %523 = vst [vmem:[%s275_s7] sm:$0xff] %v515_v37  ;;  %527 = vst [vmem:[%s275_s7 + $0x20] sm:$0xff] %v519_v38  ;;  %v516_v45 = vmul.f32 %v483_v26, %v388_v43  ;;  %v520_v46 = vmul.f32 %v503_v27, %v404_v44 }
 0x172   : > { %526 = vst [vmem:[%s275_s7 + $0x18] sm:$0xff] %v518_v41  ;;  %530 = vst [vmem:[%s275_s7 + $0x38] sm:$0xff] %v522_v42 }
 0x173   : > { %524 = vst [vmem:[%s275_s7 + $0x8] sm:$0xff] %v516_v45  ;;  %528 = vst [vmem:[%s275_s7 + $0x28] sm:$0xff] %v520_v46 }
 0x174   : > { %948 = shalt.err (!%p945_p6)
}
 0x175   : > { %s949_s23 = scalar_lea.hbm %s1288_s29, 1024  ;;  %s953_s22 = scalar_lea.hbm %s1342_s3, 2048 }
 0x176   : > { %p950_p12 = scmp.ne.s32.totalorder %s1288_s29, %s949_s23  ;;  %p954_p11 = scmp.lt.u32.totalorder %s1288_s29, %s1342_s3 }
 0x177   : > { %p955_p0 = scmp.lt.u32.totalorder %s953_s22, %s949_s23  ;;  %p957_p8 = scmp.lt.u32.totalorder %s949_s23, %s1288_s29 }
 0x178   : > { %p951_p10 = pnand %p950_p12, %p1361_p13 }
 0x179   : > { %p956_p5 = por %p955_p0, %p954_p11 }
 0x17a   : > { %p952_p9 = pneg %p951_p10 }
 0x17b   : > { %p958_p4 = por %p957_p8, %p956_p5 }
 0x17d   : > { %p959_p7 = pnand %p958_p4, %p952_p9 }
 0x17f   : > { %962 = shalt.err (!%p959_p7)
}
 0x180   : > { %s1036_s19 = smov 128   ;;  %s1037_s27 = smov 8  }
 0x181   : > { %760 = dma.vmem_to_hbm [thread:$0]  (%p1361_p13), %s1290_s5, 1024, %s1288_s29, %s532_s25, %s1036_s19, %s1036_s19, %s1037_s27  }
 0x182 PF: > { %s561_s7 = sand.u32 1, %s1005_s12   ;;  %p1362_p1 = scmp.ne.s32.totalorder %s1353_s4, 0 }
 0x183   : > { %p1363_p3 = scmp.ge.s32.totalorder %s1025_s17, 2  ;;  %s562_s15 = scalar_lea.sflag [#allocation4], %s561_s7 }
 0x185   : > { %p774_p2 = pnand %p1363_p3, %p1362_p1 }
 0x187   : > { %1000 = dma.done.wait (!%p774_p2), %s562_s15, 1024  }
 0x188   : > { %1002 = vsyncadd (!%p774_p2), %s562_s15, 4294966272  ;;  %s20_s17 = sadd.s32 1, %s1025_s17   ;;  %s1364_s12 = smov %s1009_s13 }
 0x189   : > { %p17_p6 = scmp.ge.s32.totalorder %s20_s17, 4   ;;  %s1365_s13 = smov %s1013_s14 }
 0x18a   : > { %s1366_s14 = smov %s1106_s24  ;;  %s1367_s15 = smov %s1021_s16 }
 0x18b   : > { %s1368_s16 = smov %s1370_s18  ;;  %19 = sbr.rel (!%p17_p6) target bundleno = 9 (0x9), region = 105 }
 0x192   :  { %567 = vsyncpa [#allocation3], 1 }
 0x193   :  { %569 = vsyncpa [#allocation3 + $0x1], 1 }
 0x194   :  { %570 = vsyncpa [#allocation6], 1 }
 0x195   :  { %571 = vsyncpa [#allocation4], 1 }
 0x196   :  { %573 = vsyncpa [#allocation4 + $0x1], 1 }

</bundles_post_ra>
